<compile_context>
chip_gen: v5e
topology: v5e:2x2
jax: 0.10.0
libtpu: 0.0.40
codegen_flags: <defaults>
</compile_context>

<pallas_src>
from functools import partial

import jax
import jax.numpy as jnp
from jax.experimental import pallas as pl
from jax.experimental.pallas import tpu as pltpu

LANE = 128
SUBLANE = 8
TARGET_BLOCK_BYTES = 2 * 1024 * 1024  # ~2 MiB per block per buffer


def _affine_kernel(bs_ref, y_ref, o_ref):
    # bs_ref: SMEM f32[2] = (bias, scale), already parity-selected in wrapper.
    # y_ref / o_ref: VMEM tiles of shape (block_rows, cols), original dtype.
    bias = bs_ref[0]
    scale = bs_ref[1]
    y = y_ref[...].astype(jnp.float32)
    o_ref[...] = (bias + scale * y).astype(o_ref.dtype)


@partial(jax.jit, static_argnames=("t",))
def affine_memory1_period2(y_t: jax.Array, t: int, theta: jax.Array) -> jax.Array:
    """theta is a f32[4] array: [theta_0, theta_1, theta_2, theta_3]. t is a static int."""
    orig_shape = y_t.shape
    dtype = y_t.dtype
    n = y_t.size

    # Resolve the even/odd branch at trace time (t is a static Python int).
    if t % 2 == 0:
        bias_scale = theta[0:2].astype(jnp.float32)
    else:
        bias_scale = theta[2:4].astype(jnp.float32)

    # Flatten to a lane-dense 2-D slab.  Prefer a wider lane extent when it
    # divides n exactly (denser unmasked vld/vst streams); otherwise fall back
    # to 128 with a tiny (<128-element) pad that fuses under jit.
    cols = LANE
    for c in (2048, 1024, 512, 256, 128):
        if n % c == 0:
            cols = c
            break

    flat = y_t.reshape(-1)
    pad = (-n) % cols
    if pad:
        flat = jnp.pad(flat, (0, pad))
    rows = flat.shape[0] // cols
    y2d = flat.reshape(rows, cols)

    # Biggest block (~2 MiB in the input dtype): in + out double-buffered is
    # 8 MiB, under the default scoped-VMEM limit on v5e/v6e/v7x.
    itemsize = jnp.dtype(dtype).itemsize
    max_block_rows = max(
        SUBLANE, (TARGET_BLOCK_BYTES // (cols * itemsize)) // SUBLANE * SUBLANE
    )

    if rows <= max_block_rows:
        block_rows = rows            # single block, full-extent rows
        grid = (1,)
    else:
        block_rows = max_block_rows  # multiple of 8; ragged last block handled by Pallas
        grid = (pl.cdiv(rows, block_rows),)

    out2d = pl.pallas_call(
        _affine_kernel,
        out_shape=jax.ShapeDtypeStruct((rows, cols), dtype),
        grid_spec=pltpu.PrefetchScalarGridSpec(
            num_scalar_prefetch=1,  # (bias, scale) f32[2] lands in SMEM
            grid=grid,
            in_specs=[
                pl.BlockSpec((block_rows, cols), lambda i, bs_ref: (i, 0)),
            ],
            out_specs=pl.BlockSpec((block_rows, cols), lambda i, bs_ref: (i, 0)),
        ),
        compiler_params=pltpu.CompilerParams(
            dimension_semantics=("parallel",),  # shardable across v7x's 2 TCs
        ),
    )(bias_scale, y2d)

    out_flat = out2d.reshape(-1)
    if pad:
        out_flat = out_flat[:n]
    return out_flat.reshape(orig_shape)


if __name__ == "__main__":
    # Deterministic "parameter init" (synthetic; no checkpoint load).
    theta_0, theta_1, theta_2, theta_3 = 0.5, 2.0, -1.0, 3.0
    theta = jnp.array([theta_0, theta_1, theta_2, theta_3], dtype=jnp.float32)

    key = jax.random.PRNGKey(0)
    # Small NCHW input: batch=2, channels=4, spatial=16x16.
    y_t = jax.random.normal(key, (2, 4, 16, 16), dtype=jnp.float32)

    # Even timestep branch.
    out_even = affine_memory1_period2(y_t, t=0, theta=theta)
    jax.block_until_ready(out_even)
    ref_even = theta_0 + theta_1 * y_t
    assert out_even.dtype == y_t.dtype
    assert jnp.allclose(out_even, ref_even, atol=1e-6), "even-branch mismatch"

    # Odd timestep branch.
    out_odd = affine_memory1_period2(y_t, t=3, theta=theta)
    jax.block_until_ready(out_odd)
    ref_odd = theta_2 + theta_3 * y_t
    assert jnp.allclose(out_odd, ref_odd, atol=1e-6), "odd-branch mismatch"

    # Lower-precision path (dtype preserved end-to-end, f32 math inside kernel).
    y_bf16 = y_t.astype(jnp.bfloat16)
    out_bf16 = affine_memory1_period2(y_bf16, t=0, theta=theta)
    jax.block_until_ready(out_bf16)
    ref_bf16 = (theta_0 + theta_1 * y_bf16.astype(jnp.float32)).astype(jnp.bfloat16)
    assert out_bf16.dtype == jnp.bfloat16
    assert jnp.allclose(out_bf16.astype(jnp.float32), ref_bf16.astype(jnp.float32),
                        atol=1e-2), "bf16-branch mismatch"

    # Non-128-divisible element count (exercises the tiny-pad path).
    y_odd = jax.random.normal(jax.random.PRNGKey(0), (3, 5, 7), dtype=jnp.float32)
    out_odd_shape = affine_memory1_period2(y_odd, t=1, theta=theta)
    jax.block_until_ready(out_odd_shape)
    assert jnp.allclose(out_odd_shape, theta_2 + theta_3 * y_odd, atol=1e-6), "ragged mismatch"

    print("KERNEL_OK")
</pallas_src>

<mosaic_0001>
module attributes {stable_mosaic.version = 11 : i64} {
  func.func @_affine_kernel(%arg0: i32, %arg1: memref<2xf32, #tpu.memory_space<smem>>, %arg2: memref<1x2048xf32, #tpu.memory_space<vmem>>, %arg3: memref<1x2048xf32, #tpu.memory_space<vmem>>) attributes {dimension_semantics = [#tpu.dimension_semantics<parallel>], iteration_bounds = array<i64: 1>, scalar_prefetch = 1 : i64, scratch_operands = 0 : i64, tpu.core_type = #tpu.core_type<tc>, window_params = [{transform_indices = @transform_0, window_bounds = array<i64: 1, 2048>}, {transform_indices = @transform_1, window_bounds = array<i64: 1, 2048>}]} {
    %c0 = arith.constant 0 : index
    %0 = memref.load %arg1[%c0] : memref<2xf32, #tpu.memory_space<smem>>
    %c1 = arith.constant 1 : index
    %1 = memref.load %arg1[%c1] : memref<2xf32, #tpu.memory_space<smem>>
    %c0_0 = arith.constant 0 : index
    %c0_1 = arith.constant 0 : index
    %2 = vector.load %arg2[%c0_0, %c0_1] : memref<1x2048xf32, #tpu.memory_space<vmem>>, vector<1x2048xf32>
    %3 = vector.broadcast %1 : f32 to vector<1x2048xf32>
    %4 = arith.mulf %3, %2 : vector<1x2048xf32>
    %5 = vector.broadcast %0 : f32 to vector<1x2048xf32>
    %6 = arith.addf %5, %4 : vector<1x2048xf32>
    %c0_2 = arith.constant 0 : index
    %c0_3 = arith.constant 0 : index
    %7 = vector.load %arg3[%c0_2, %c0_3] : memref<1x2048xf32, #tpu.memory_space<vmem>>, vector<1x2048xf32>
    tpu.vector_store %arg3[%c0_2, %c0_3], %6 {strides = array<i32>} : memref<1x2048xf32, #tpu.memory_space<vmem>>, vector<1x2048xf32>,
    return
  }
  func.func @transform_0(%arg0: i32, %arg1: memref<2xf32, #tpu.memory_space<smem>>) -> (i32, i32) {
    %c0_i32 = arith.constant 0 : i32
    %c0_i32_0 = arith.constant 0 : i32
    return %arg0, %c0_i32 : i32, i32
  }
  func.func @transform_1(%arg0: i32, %arg1: memref<2xf32, #tpu.memory_space<smem>>) -> (i32, i32) {
    %c0_i32 = arith.constant 0 : i32
    %c0_i32_0 = arith.constant 0 : i32
    return %arg0, %c0_i32 : i32, i32
  }
}

</mosaic_0001>

<bundles_post_ra>
// kernel: affine_memory1_period2.1
= control target key start
LH: loop header
LB: loop body
LE: loop exit
PB: predicated region body
PF: predicated region fallthrough
CT: control target
= control target key end

     0   :  { %s49_s12 = smov [#allocation3]   ;;  %s80_s0 = inlined_call_operand.vmem [shape: f32[2], index: 0, kind: input, shape index: {}]   ;;  %s81_s1 = inlined_call_operand.vmem [shape: f32[1,2048], index: 1, kind: input, shape index: {}]   ;;  %s82_s2 = inlined_call_operand.vmem [shape: f32[1,2048], index: 2, kind: output, shape index: {}]  }
   0x1   :  { %s8_s11 = sshll.u32 %s80_s0, 4  ;;  %s9_s11 = int_to_ptr.vmem [resolvable:$true] %s8_s11 }
   0x2   :  { %11 = dma.vmem_to_smem %s9_s11, 16, %s49_s12, [#allocation2] }
   0x3   :  { %47 = dma.done.wait [#allocation2], 16 }
   0x4   :  { %48 = vsyncadd [#allocation2], 4294967280 }
   0x5   :  { %14 = sfence }
   0x6   :  { %s17_s13 = sld [smem:[#allocation3]]  ;;  %v19_v0 = vld [vmem:[%s81_s1] sm:$0xff]  ;;  %v20_v1 = vld [vmem:[%s81_s1 + $0x8] sm:$0xff] }
   0x7   :  { %s33_s14 = sld [smem:[#allocation3 + $0x1]] }
   0xc   :  { %v24_v3 = vstv %s17_s13 }
   0xd   :  { %v21_v2 = vstv %s33_s14 }
   0xe   :  { %v22_v4 = vmul.f32 %v21_v2, %v19_v0  ;;  %v23_v5 = vmul.f32 %v21_v2, %v20_v1 }
  0x10   :  { %v25_v6 = vadd.f32 %v24_v3, %v22_v4  ;;  %v26_v7 = vadd.f32 %v24_v3, %v23_v5 }
  0x12   :  { %27 = vst [vmem:[%s82_s2] sm:$0xff] %v25_v6 }
  0x13   :  { %28 = vst [vmem:[%s82_s2 + $0x8] sm:$0xff] %v26_v7 }

</bundles_post_ra>
